<compile_context>
chip_gen: v7x
topology: tpu7x:2x2x1
jax: 0.10.0
libtpu: 0.0.40
codegen_flags: <defaults>
</compile_context>

<pallas_src>
import jax
import jax.numpy as jnp
from jax.experimental import pallas as pl
from jax.experimental.pallas import tpu as pltpu

LEAKY_SLOPE = 0.1
BN_EPS = 1e-5
LANE = 128
SUBLANE = 8


def _round_up(v, m):
    return ((v + m - 1) // m) * m


def _cdiv(a, b):
    return (a + b - 1) // b


# -----------------------------------------------------------------------------
# Parameter construction (mirrors AutoEncoder.init_sequential)
# -----------------------------------------------------------------------------
def build_autoencoder_raw(key, n_genes, encoder=(256, 256), decoder=(256, 256),
                          latent_dimensions=10):
    """Raw layer list exactly mirroring the torch module (eval-mode BN params)."""
    gain = (2.0 / (1.0 + LEAKY_SLOPE ** 2)) ** 0.5  # calculate_gain('leaky_relu', 0.1)
    enc_dims = [n_genes] + list(encoder) + [latent_dimensions]
    dec_dims = [latent_dimensions] + list(decoder) + [n_genes]

    raw = []
    keys = iter(jax.random.split(key, 4 * (len(enc_dims) + len(dec_dims))))

    def add_linear(n_in, n_out):
        bound = gain * (6.0 / (n_in + n_out)) ** 0.5       # xavier_uniform_ bound
        # torch stores Linear weight as [out, in]; we keep the transpose [in, out].
        w = jax.random.uniform(next(keys), (n_in, n_out), jnp.float32, -bound, bound)
        raw.append(("linear", w, jnp.zeros((1, n_out), jnp.float32)))

    def add_post(n_out):
        raw.append(("lrelu",))
        gamma = jnp.ones((1, n_out), jnp.float32)
        beta = jnp.zeros((1, n_out), jnp.float32)
        r_mean = jnp.zeros((1, n_out), jnp.float32)
        r_var = jnp.ones((1, n_out), jnp.float32)
        scale = gamma / jnp.sqrt(r_var + BN_EPS)
        shift = beta - r_mean * scale
        raw.append(("bn", scale, shift))
        raw.append(("dropout",))

    for i in range(len(enc_dims) - 1):
        add_linear(enc_dims[i], enc_dims[i + 1])
        if i < len(enc_dims) - 2:
            add_post(enc_dims[i + 1])
    for i in range(len(dec_dims) - 1):
        add_linear(dec_dims[i], dec_dims[i + 1])
        if i > 0:
            add_post(dec_dims[i + 1])
    return raw


def fold_and_pad(raw_layers, w_dtype=jnp.bfloat16):
    """Fold BN into the next Linear, drop dropout, pad only interior dims to 128.

    The first-layer input dim and the last-layer output dim are left unpadded so
    the wrapper never has to pad/slice the feature axis of x or the output.
    """
    linears = []          # [W(f32), b(f32), lrelu_after]
    pending = None        # (scale, shift) of a BN waiting to fold into next Linear
    for layer in raw_layers:
        kind = layer[0]
        if kind == "linear":
            W, b = layer[1], layer[2]
            if pending is not None:
                scale, shift = pending
                b = shift @ W + b                  # (x*s + t) @ W + b
                W = scale.reshape(-1, 1) * W
                pending = None
            linears.append([W, b, False])
        elif kind == "lrelu":
            linears[-1][2] = True
        elif kind == "bn":
            pending = (layer[1], layer[2])
        elif kind == "dropout":
            pass
    final_affine = pending                          # trailing BN (no Linear follows)

    n_lin = len(linears)
    n_in_orig = linears[0][0].shape[0]
    n_out_orig = linears[-1][0].shape[1]
    padded = []
    flags = []
    for li, (W, b, act) in enumerate(linears):
        n_in, n_out = W.shape
        ip = n_in if li == 0 else _round_up(n_in, LANE)
        op = n_out if li == n_lin - 1 else _round_up(n_out, LANE)
        Wp = jnp.pad(W, ((0, ip - n_in), (0, op - n_out))).astype(w_dtype)
        bp = jnp.pad(b, ((0, 0), (0, op - n_out))).astype(jnp.float32)
        padded.append((Wp, bp))
        flags.append(bool(act))

    if final_affine is not None:
        s, t = final_affine                         # shape (1, n_out_orig), no pad
        final_affine = (s.astype(jnp.float32), t.astype(jnp.float32))

    return {
        "linears": padded,
        "lrelu_flags": tuple(flags),
        "final_affine": final_affine,
        "n_in": n_in_orig,
        "n_out": n_out_orig,
    }


# -----------------------------------------------------------------------------
# Pallas kernel
# -----------------------------------------------------------------------------
def _make_kernel(lrelu_flags, has_final_affine, compute_dtype):
    n_lin = len(lrelu_flags)

    def kernel(x_ref, *refs):
        out_ref = refs[-1]
        params = refs[:-1]
        # bf16 input -> no-op cast; f32 input gets cast once in VMEM.
        x = x_ref[...].astype(compute_dtype)
        idx = 0
        for li in range(n_lin):
            w = params[idx][...]
            b = params[idx + 1][...]
            idx += 2
            # bf16 MXU matmul with f32 accumulation; bias add / LeakyReLU in f32.
            h = jnp.dot(x, w, preferred_element_type=jnp.float32) + b
            if lrelu_flags[li]:
                h = jnp.where(h >= 0, h, LEAKY_SLOPE * h)
            # Store inter-layer activations in the narrow compute dtype.
            x = h.astype(compute_dtype) if li < n_lin - 1 else h
        if has_final_affine:
            x = x * params[idx][...] + params[idx + 1][...]
        out_ref[...] = x.astype(out_ref.dtype)

    return kernel


# -----------------------------------------------------------------------------
# Generation-aware tiling / VMEM sizing
# -----------------------------------------------------------------------------
def _vmem_capacity_bytes():
    try:
        return int(pltpu.get_tpu_info().vmem_capacity_bytes)
    except Exception:
        return 64 << 20        # conservative fallback (v7x per-TC VMEM)


def _select_tiling(batch, per_row_bytes, tile_budget_bytes):
    """Pick (tile_b, n_tiles) minimizing batch padding within the VMEM budget."""
    max_tile = (tile_budget_bytes // max(per_row_bytes, 1)) // SUBLANE * SUBLANE
    max_tile = max(SUBLANE, min(512, max_tile))
    n_tiles = _cdiv(batch, max_tile)
    if n_tiles == 1:
        if batch >= 2 * SUBLANE:
            # Give v7x's second TensorCore a tile to work on (no-op on v5e/v6e).
            n_tiles = 2
        else:
            return batch, 1            # full-array block: no batch padding at all
    tile_b = _round_up(_cdiv(batch, n_tiles), SUBLANE)
    n_tiles = _cdiv(batch, tile_b)
    return tile_b, n_tiles


# -----------------------------------------------------------------------------
# Forward wrapper
# -----------------------------------------------------------------------------
def autoencoder_forward(x, model, out_dtype=None):
    """Whole AutoEncoder forward (eval mode) as one batch-tiled Pallas program."""
    batch, n_feat = x.shape
    assert n_feat == model["n_in"]
    n_out = model["n_out"]
    out_dtype = x.dtype if out_dtype is None else out_dtype
    in_item = jnp.dtype(x.dtype).itemsize
    out_item = jnp.dtype(out_dtype).itemsize
    compute_dtype = jnp.bfloat16

    # ---- parameter bookkeeping -------------------------------------------------
    flat_params = []
    for W, b in model["linears"]:
        flat_params.extend([W, b])
    if model["final_affine"] is not None:
        flat_params.extend(list(model["final_affine"]))
    param_bytes = sum(int(p.size) * p.dtype.itemsize for p in flat_params)

    # Single-buffer the loop-invariant weights when they are large enough for the
    # double-buffer to matter (keeps the small/common path on default buffering).
    single_buffer_params = param_bytes > (4 << 20)
    param_buf_count = 1 if single_buffer_params else 2
    pm_kwargs = (dict(pipeline_mode=pl.Buffered(1)) if single_buffer_params else {})

    param_specs = []
    for p in flat_params:
        param_specs.append(pl.BlockSpec(p.shape, lambda i: (0, 0), **pm_kwargs))

    # ---- tiling / VMEM budget ---------------------------------------------------
    max_width = max(max(int(W.shape[0]), int(W.shape[1])) for W, _ in model["linears"])
    # Double-buffered x / out tiles + activation working set, per batch row.
    per_row = (2 * n_feat * in_item + 2 * n_out * out_item
               + 2 * n_feat + 4 * n_out + 8 * max_width)
    vmem_cap = _vmem_capacity_bytes()
    tile_budget = max(int(vmem_cap * 0.85) - param_bytes * param_buf_count,
                      SUBLANE * per_row)
    tile_b, n_tiles = _select_tiling(batch, per_row, tile_budget)
    batch_pad = tile_b * n_tiles

    # Only wrapper copy (if any): a minimal batch pad.  No feature pad, no cast.
    x_in = x if batch_pad == batch else jnp.pad(x, ((0, batch_pad - batch), (0, 0)))

    # ---- cost / compiler params -------------------------------------------------
    flops = 2 * batch_pad * sum(int(W.shape[0]) * int(W.shape[1])
                                for W, _ in model["linears"])
    io_bytes = batch_pad * (n_feat * in_item + n_out * out_item)
    cost = pl.CostEstimate(flops=int(flops), transcendentals=0,
                           bytes_accessed=int(io_bytes + param_bytes))

    vmem_needed = param_bytes * param_buf_count + tile_b * per_row
    cp_kwargs = dict(dimension_semantics=("parallel",))
    if vmem_needed > (24 << 20):
        cp_kwargs["vmem_limit_bytes"] = int(min(vmem_needed + (4 << 20),
                                                int(vmem_cap * 0.9)))
    compiler_params = pltpu.CompilerParams(**cp_kwargs)

    kernel = _make_kernel(model["lrelu_flags"],
                          model["final_affine"] is not None,
                          compute_dtype)

    out = pl.pallas_call(
        kernel,
        out_shape=jax.ShapeDtypeStruct((batch_pad, n_out), out_dtype),
        grid=(n_tiles,),
        in_specs=[pl.BlockSpec((tile_b, n_feat), lambda i: (i, 0))] + param_specs,
        out_specs=pl.BlockSpec((tile_b, n_out), lambda i: (i, 0)),
        compiler_params=compiler_params,
        cost_estimate=cost,
    )(x_in, *flat_params)

    return out if batch_pad == batch else out[:batch]


# -----------------------------------------------------------------------------
# References
# -----------------------------------------------------------------------------
def autoencoder_reference_folded(x, model, out_dtype=None):
    """Pure-JAX mirror of the exact kernel math (folded params, bf16 activations)."""
    out_dtype = x.dtype if out_dtype is None else out_dtype
    n_lin = len(model["linears"])
    h = x.astype(jnp.bfloat16)
    for li, ((w, b), act) in enumerate(zip(model["linears"], model["lrelu_flags"])):
        y = jnp.dot(h, w, preferred_element_type=jnp.float32) + b
        if act:
            y = jnp.where(y >= 0, y, LEAKY_SLOPE * y)
        h = y.astype(jnp.bfloat16) if li < n_lin - 1 else y
    if model["final_affine"] is not None:
        s, t = model["final_affine"]
        h = h * s + t
    return h.astype(out_dtype)


def autoencoder_reference_raw(x, raw_layers):
    """Pure-f32 reference with the original (unfolded, unpadded) layer list."""
    for layer in raw_layers:
        kind = layer[0]
        if kind == "linear":
            x = x @ layer[1] + layer[2]
        elif kind == "lrelu":
            x = jnp.where(x >= 0, x, LEAKY_SLOPE * x)
        elif kind == "bn":
            x = x * layer[1] + layer[2]
        elif kind == "dropout":
            pass
    return x


# -----------------------------------------------------------------------------
# Test
# -----------------------------------------------------------------------------
if __name__ == "__main__":
    n_genes = 64
    batch = 8
    latent = 10

    key = jax.random.PRNGKey(0)
    key_params, key_x = jax.random.split(key)

    raw_layers = build_autoencoder_raw(key_params, n_genes,
                                       encoder=(256, 256), decoder=(256, 256),
                                       latent_dimensions=latent)
    model = fold_and_pad(raw_layers)

    x_f32 = jax.random.normal(key_x, (batch, n_genes), dtype=jnp.float32)
    # Producer supplies bf16 input -> half-width input DMA, bf16 output writeback.
    x = x_f32.astype(jnp.bfloat16)

    out = autoencoder_forward(x, model)
    out = jax.block_until_ready(out)
    assert out.shape == (batch, n_genes), out.shape
    assert out.dtype == jnp.bfloat16, out.dtype
    out_f32 = out.astype(jnp.float32)

    # Check 1: exact mirror of the kernel math (same folding / dtypes).
    ref_mirror = autoencoder_reference_folded(x, model).astype(jnp.float32)
    assert jnp.allclose(out_f32, ref_mirror, rtol=2e-2, atol=2e-2), \
        "mismatch vs. folded bf16 JAX mirror"

    # Check 2: original module semantics in full f32 (tolerance covers bf16).
    ref_raw = autoencoder_reference_raw(x_f32, raw_layers)
    assert jnp.allclose(out_f32, ref_raw, rtol=5e-2, atol=5e-2), \
        "mismatch vs. raw f32 module reference"

    print("KERNEL_OK")
</pallas_src>

<mosaic_0001>
module attributes {stable_mosaic.version = 11 : i64} {
  func.func @kernel(%arg0: i32, %arg1: memref<8x64xbf16, #tpu.memory_space<vmem>>, %arg2: memref<64x256xbf16, #tpu.memory_space<vmem>>, %arg3: memref<1x256xf32, #tpu.memory_space<vmem>>, %arg4: memref<256x256xbf16, #tpu.memory_space<vmem>>, %arg5: memref<1x256xf32, #tpu.memory_space<vmem>>, %arg6: memref<256x128xbf16, #tpu.memory_space<vmem>>, %arg7: memref<1x128xf32, #tpu.memory_space<vmem>>, %arg8: memref<128x256xbf16, #tpu.memory_space<vmem>>, %arg9: memref<1x256xf32, #tpu.memory_space<vmem>>, %arg10: memref<256x256xbf16, #tpu.memory_space<vmem>>, %arg11: memref<1x256xf32, #tpu.memory_space<vmem>>, %arg12: memref<256x64xbf16, #tpu.memory_space<vmem>>, %arg13: memref<1x64xf32, #tpu.memory_space<vmem>>, %arg14: memref<1x64xf32, #tpu.memory_space<vmem>>, %arg15: memref<1x64xf32, #tpu.memory_space<vmem>>, %arg16: memref<8x64xbf16, #tpu.memory_space<vmem>>) attributes {dimension_semantics = [#tpu.dimension_semantics<parallel>], iteration_bounds = array<i64: 1>, scalar_prefetch = 0 : i64, scratch_operands = 0 : i64, tpu.core_type = #tpu.core_type<tc>, window_params = [{transform_indices = @transform_0, window_bounds = array<i64: 8, 64>}, {pipeline_mode = #tpu.pipeline_mode<synchronous>, transform_indices = @transform_1, window_bounds = array<i64: 64, 256>}, {pipeline_mode = #tpu.pipeline_mode<synchronous>, transform_indices = @transform_2, window_bounds = array<i64: 1, 256>}, {pipeline_mode = #tpu.pipeline_mode<synchronous>, transform_indices = @transform_3, window_bounds = array<i64: 256, 256>}, {pipeline_mode = #tpu.pipeline_mode<synchronous>, transform_indices = @transform_4, window_bounds = array<i64: 1, 256>}, {pipeline_mode = #tpu.pipeline_mode<synchronous>, transform_indices = @transform_5, window_bounds = array<i64: 256, 128>}, {pipeline_mode = #tpu.pipeline_mode<synchronous>, transform_indices = @transform_6, window_bounds = array<i64: 1, 128>}, {pipeline_mode = #tpu.pipeline_mode<synchronous>, transform_indices = @transform_7, window_bounds = array<i64: 128, 256>}, {pipeline_mode = #tpu.pipeline_mode<synchronous>, transform_indices = @transform_8, window_bounds = array<i64: 1, 256>}, {pipeline_mode = #tpu.pipeline_mode<synchronous>, transform_indices = @transform_9, window_bounds = array<i64: 256, 256>}, {pipeline_mode = #tpu.pipeline_mode<synchronous>, transform_indices = @transform_10, window_bounds = array<i64: 1, 256>}, {pipeline_mode = #tpu.pipeline_mode<synchronous>, transform_indices = @transform_11, window_bounds = array<i64: 256, 64>}, {pipeline_mode = #tpu.pipeline_mode<synchronous>, transform_indices = @transform_12, window_bounds = array<i64: 1, 64>}, {pipeline_mode = #tpu.pipeline_mode<synchronous>, transform_indices = @transform_13, window_bounds = array<i64: 1, 64>}, {pipeline_mode = #tpu.pipeline_mode<synchronous>, transform_indices = @transform_14, window_bounds = array<i64: 1, 64>}, {transform_indices = @transform_15, window_bounds = array<i64: 8, 64>}]} {
    %c0 = arith.constant 0 : index
    %c0_0 = arith.constant 0 : index
    %0 = vector.load %arg1[%c0, %c0_0] : memref<8x64xbf16, #tpu.memory_space<vmem>>, vector<8x64xbf16>
    %c0_1 = arith.constant 0 : index
    %c0_2 = arith.constant 0 : index
    %1 = vector.load %arg2[%c0_1, %c0_2] : memref<64x256xbf16, #tpu.memory_space<vmem>>, vector<64x256xbf16>
    %c0_3 = arith.constant 0 : index
    %c0_4 = arith.constant 0 : index
    %2 = vector.load %arg3[%c0_3, %c0_4] : memref<1x256xf32, #tpu.memory_space<vmem>>, vector<1x256xf32>
    %cst = arith.constant dense<0.000000e+00> : vector<8x256xf32>
    %3 = tpu.matmul %0, %1, %cst {dimension_numbers = #tpu.dot_dimension_numbers<[1], [0], [0], [1], [0, 0, 1, 1], [], []>} : vector<8x64xbf16>, vector<64x256xbf16>, vector<8x256xf32> -> vector<8x256xf32>
    %4 = vector.broadcast %2 : vector<1x256xf32> to vector<8x256xf32>
    %5 = arith.addf %3, %4 : vector<8x256xf32>
    %cst_5 = arith.constant 0.000000e+00 : f32
    %6 = vector.broadcast %cst_5 : f32 to vector<8x256xf32>
    %7 = arith.cmpf oge, %5, %6 : vector<8x256xf32>
    %cst_6 = arith.constant 1.000000e-01 : f32
    %8 = vector.broadcast %cst_6 : f32 to vector<8x256xf32>
    %9 = arith.mulf %8, %5 : vector<8x256xf32>
    %10 = arith.select %7, %5, %9 : vector<8x256xi1>, vector<8x256xf32>
    %11 = arith.truncf %10 : vector<8x256xf32> to vector<8x256xbf16>
    %c0_7 = arith.constant 0 : index
    %c0_8 = arith.constant 0 : index
    %12 = vector.load %arg4[%c0_7, %c0_8] : memref<256x256xbf16, #tpu.memory_space<vmem>>, vector<256x256xbf16>
    %c0_9 = arith.constant 0 : index
    %c0_10 = arith.constant 0 : index
    %13 = vector.load %arg5[%c0_9, %c0_10] : memref<1x256xf32, #tpu.memory_space<vmem>>, vector<1x256xf32>
    %cst_11 = arith.constant dense<0.000000e+00> : vector<8x256xf32>
    %14 = tpu.matmul %11, %12, %cst_11 {dimension_numbers = #tpu.dot_dimension_numbers<[1], [0], [0], [1], [0, 0, 1, 1], [], []>} : vector<8x256xbf16>, vector<256x256xbf16>, vector<8x256xf32> -> vector<8x256xf32>
    %15 = vector.broadcast %13 : vector<1x256xf32> to vector<8x256xf32>
    %16 = arith.addf %14, %15 : vector<8x256xf32>
    %cst_12 = arith.constant 0.000000e+00 : f32
    %17 = vector.broadcast %cst_12 : f32 to vector<8x256xf32>
    %18 = arith.cmpf oge, %16, %17 : vector<8x256xf32>
    %cst_13 = arith.constant 1.000000e-01 : f32
    %19 = vector.broadcast %cst_13 : f32 to vector<8x256xf32>
    %20 = arith.mulf %19, %16 : vector<8x256xf32>
    %21 = arith.select %18, %16, %20 : vector<8x256xi1>, vector<8x256xf32>
    %22 = arith.truncf %21 : vector<8x256xf32> to vector<8x256xbf16>
    %c0_14 = arith.constant 0 : index
    %c0_15 = arith.constant 0 : index
    %23 = vector.load %arg6[%c0_14, %c0_15] : memref<256x128xbf16, #tpu.memory_space<vmem>>, vector<256x128xbf16>
    %c0_16 = arith.constant 0 : index
    %c0_17 = arith.constant 0 : index
    %24 = vector.load %arg7[%c0_16, %c0_17] : memref<1x128xf32, #tpu.memory_space<vmem>>, vector<1x128xf32>
    %cst_18 = arith.constant dense<0.000000e+00> : vector<8x128xf32>
    %25 = tpu.matmul %22, %23, %cst_18 {dimension_numbers = #tpu.dot_dimension_numbers<[1], [0], [0], [1], [0, 0, 1, 1], [], []>} : vector<8x256xbf16>, vector<256x128xbf16>, vector<8x128xf32> -> vector<8x128xf32>
    %26 = vector.broadcast %24 : vector<1x128xf32> to vector<8x128xf32>
    %27 = arith.addf %25, %26 : vector<8x128xf32>
    %28 = arith.truncf %27 : vector<8x128xf32> to vector<8x128xbf16>
    %c0_19 = arith.constant 0 : index
    %c0_20 = arith.constant 0 : index
    %29 = vector.load %arg8[%c0_19, %c0_20] : memref<128x256xbf16, #tpu.memory_space<vmem>>, vector<128x256xbf16>
    %c0_21 = arith.constant 0 : index
    %c0_22 = arith.constant 0 : index
    %30 = vector.load %arg9[%c0_21, %c0_22] : memref<1x256xf32, #tpu.memory_space<vmem>>, vector<1x256xf32>
    %cst_23 = arith.constant dense<0.000000e+00> : vector<8x256xf32>
    %31 = tpu.matmul %28, %29, %cst_23 {dimension_numbers = #tpu.dot_dimension_numbers<[1], [0], [0], [1], [0, 0, 1, 1], [], []>} : vector<8x128xbf16>, vector<128x256xbf16>, vector<8x256xf32> -> vector<8x256xf32>
    %32 = vector.broadcast %30 : vector<1x256xf32> to vector<8x256xf32>
    %33 = arith.addf %31, %32 : vector<8x256xf32>
    %34 = arith.truncf %33 : vector<8x256xf32> to vector<8x256xbf16>
    %c0_24 = arith.constant 0 : index
    %c0_25 = arith.constant 0 : index
    %35 = vector.load %arg10[%c0_24, %c0_25] : memref<256x256xbf16, #tpu.memory_space<vmem>>, vector<256x256xbf16>
    %c0_26 = arith.constant 0 : index
    %c0_27 = arith.constant 0 : index
    %36 = vector.load %arg11[%c0_26, %c0_27] : memref<1x256xf32, #tpu.memory_space<vmem>>, vector<1x256xf32>
    %cst_28 = arith.constant dense<0.000000e+00> : vector<8x256xf32>
    %37 = tpu.matmul %34, %35, %cst_28 {dimension_numbers = #tpu.dot_dimension_numbers<[1], [0], [0], [1], [0, 0, 1, 1], [], []>} : vector<8x256xbf16>, vector<256x256xbf16>, vector<8x256xf32> -> vector<8x256xf32>
    %38 = vector.broadcast %36 : vector<1x256xf32> to vector<8x256xf32>
    %39 = arith.addf %37, %38 : vector<8x256xf32>
    %cst_29 = arith.constant 0.000000e+00 : f32
    %40 = vector.broadcast %cst_29 : f32 to vector<8x256xf32>
    %41 = arith.cmpf oge, %39, %40 : vector<8x256xf32>
    %cst_30 = arith.constant 1.000000e-01 : f32
    %42 = vector.broadcast %cst_30 : f32 to vector<8x256xf32>
    %43 = arith.mulf %42, %39 : vector<8x256xf32>
    %44 = arith.select %41, %39, %43 : vector<8x256xi1>, vector<8x256xf32>
    %45 = arith.truncf %44 : vector<8x256xf32> to vector<8x256xbf16>
    %c0_31 = arith.constant 0 : index
    %c0_32 = arith.constant 0 : index
    %46 = vector.load %arg12[%c0_31, %c0_32] : memref<256x64xbf16, #tpu.memory_space<vmem>>, vector<256x64xbf16>
    %c0_33 = arith.constant 0 : index
    %c0_34 = arith.constant 0 : index
    %47 = vector.load %arg13[%c0_33, %c0_34] : memref<1x64xf32, #tpu.memory_space<vmem>>, vector<1x64xf32>
    %cst_35 = arith.constant dense<0.000000e+00> : vector<8x64xf32>
    %48 = tpu.matmul %45, %46, %cst_35 {dimension_numbers = #tpu.dot_dimension_numbers<[1], [0], [0], [1], [0, 0, 1, 1], [], []>} : vector<8x256xbf16>, vector<256x64xbf16>, vector<8x64xf32> -> vector<8x64xf32>
    %49 = vector.broadcast %47 : vector<1x64xf32> to vector<8x64xf32>
    %50 = arith.addf %48, %49 : vector<8x64xf32>
    %cst_36 = arith.constant 0.000000e+00 : f32
    %51 = vector.broadcast %cst_36 : f32 to vector<8x64xf32>
    %52 = arith.cmpf oge, %50, %51 : vector<8x64xf32>
    %cst_37 = arith.constant 1.000000e-01 : f32
    %53 = vector.broadcast %cst_37 : f32 to vector<8x64xf32>
    %54 = arith.mulf %53, %50 : vector<8x64xf32>
    %55 = arith.select %52, %50, %54 : vector<8x64xi1>, vector<8x64xf32>
    %c0_38 = arith.constant 0 : index
    %c0_39 = arith.constant 0 : index
    %56 = vector.load %arg14[%c0_38, %c0_39] : memref<1x64xf32, #tpu.memory_space<vmem>>, vector<1x64xf32>
    %57 = vector.broadcast %56 : vector<1x64xf32> to vector<8x64xf32>
    %58 = arith.mulf %55, %57 : vector<8x64xf32>
    %c0_40 = arith.constant 0 : index
    %c0_41 = arith.constant 0 : index
    %59 = vector.load %arg15[%c0_40, %c0_41] : memref<1x64xf32, #tpu.memory_space<vmem>>, vector<1x64xf32>
    %60 = vector.broadcast %59 : vector<1x64xf32> to vector<8x64xf32>
    %61 = arith.addf %58, %60 : vector<8x64xf32>
    %62 = arith.truncf %61 : vector<8x64xf32> to vector<8x64xbf16>
    %c0_42 = arith.constant 0 : index
    %c0_43 = arith.constant 0 : index
    %63 = vector.load %arg16[%c0_42, %c0_43] : memref<8x64xbf16, #tpu.memory_space<vmem>>, vector<8x64xbf16>
    tpu.vector_store %arg16[%c0_42, %c0_43], %62 {strides = array<i32>} : memref<8x64xbf16, #tpu.memory_space<vmem>>, vector<8x64xbf16>,
    return
  }
  func.func @transform_0(%arg0: i32) -> (i32, i32) {
    %c0_i32 = arith.constant 0 : i32
    %c0_i32_0 = arith.constant 0 : i32
    return %arg0, %c0_i32 : i32, i32
  }
  func.func @transform_1(%arg0: i32) -> (i32, i32) {
    %c0_i32 = arith.constant 0 : i32
    %c0_i32_0 = arith.constant 0 : i32
    %c0_i32_1 = arith.constant 0 : i32
    return %c0_i32, %c0_i32_0 : i32, i32
  }
  func.func @transform_2(%arg0: i32) -> (i32, i32) {
    %c0_i32 = arith.constant 0 : i32
    %c0_i32_0 = arith.constant 0 : i32
    %c0_i32_1 = arith.constant 0 : i32
    return %c0_i32, %c0_i32_0 : i32, i32
  }
  func.func @transform_3(%arg0: i32) -> (i32, i32) {
    %c0_i32 = arith.constant 0 : i32
    %c0_i32_0 = arith.constant 0 : i32
    %c0_i32_1 = arith.constant 0 : i32
    return %c0_i32, %c0_i32_0 : i32, i32
  }
  func.func @transform_4(%arg0: i32) -> (i32, i32) {
    %c0_i32 = arith.constant 0 : i32
    %c0_i32_0 = arith.constant 0 : i32
    %c0_i32_1 = arith.constant 0 : i32
    return %c0_i32, %c0_i32_0 : i32, i32
  }
  func.func @transform_5(%arg0: i32) -> (i32, i32) {
    %c0_i32 = arith.constant 0 : i32
    %c0_i32_0 = arith.constant 0 : i32
    %c0_i32_1 = arith.constant 0 : i32
    return %c0_i32, %c0_i32_0 : i32, i32
  }
  func.func @transform_6(%arg0: i32) -> (i32, i32) {
    %c0_i32 = arith.constant 0 : i32
    %c0_i32_0 = arith.constant 0 : i32
    %c0_i32_1 = arith.constant 0 : i32
    return %c0_i32, %c0_i32_0 : i32, i32
  }
  func.func @transform_7(%arg0: i32) -> (i32, i32) {
    %c0_i32 = arith.constant 0 : i32
    %c0_i32_0 = arith.constant 0 : i32
    %c0_i32_1 = arith.constant 0 : i32
    return %c0_i32, %c0_i32_0 : i32, i32
  }
  func.func @transform_8(%arg0: i32) -> (i32, i32) {
    %c0_i32 = arith.constant 0 : i32
    %c0_i32_0 = arith.constant 0 : i32
    %c0_i32_1 = arith.constant 0 : i32
    return %c0_i32, %c0_i32_0 : i32, i32
  }
  func.func @transform_9(%arg0: i32) -> (i32, i32) {
    %c0_i32 = arith.constant 0 : i32
    %c0_i32_0 = arith.constant 0 : i32
    %c0_i32_1 = arith.constant 0 : i32
    return %c0_i32, %c0_i32_0 : i32, i32
  }
  func.func @transform_10(%arg0: i32) -> (i32, i32) {
    %c0_i32 = arith.constant 0 : i32
    %c0_i32_0 = arith.constant 0 : i32
    %c0_i32_1 = arith.constant 0 : i32
    return %c0_i32, %c0_i32_0 : i32, i32
  }
  func.func @transform_11(%arg0: i32) -> (i32, i32) {
    %c0_i32 = arith.constant 0 : i32
    %c0_i32_0 = arith.constant 0 : i32
    %c0_i32_1 = arith.constant 0 : i32
    return %c0_i32, %c0_i32_0 : i32, i32
  }
  func.func @transform_12(%arg0: i32) -> (i32, i32) {
    %c0_i32 = arith.constant 0 : i32
    %c0_i32_0 = arith.constant 0 : i32
    %c0_i32_1 = arith.constant 0 : i32
    return %c0_i32, %c0_i32_0 : i32, i32
  }
  func.func @transform_13(%arg0: i32) -> (i32, i32) {
    %c0_i32 = arith.constant 0 : i32
    %c0_i32_0 = arith.constant 0 : i32
    %c0_i32_1 = arith.constant 0 : i32
    return %c0_i32, %c0_i32_0 : i32, i32
  }
  func.func @transform_14(%arg0: i32) -> (i32, i32) {
    %c0_i32 = arith.constant 0 : i32
    %c0_i32_0 = arith.constant 0 : i32
    %c0_i32_1 = arith.constant 0 : i32
    return %c0_i32, %c0_i32_0 : i32, i32
  }
  func.func @transform_15(%arg0: i32) -> (i32, i32) {
    %c0_i32 = arith.constant 0 : i32
    %c0_i32_0 = arith.constant 0 : i32
    return %arg0, %c0_i32 : i32, i32
  }
}

</mosaic_0001>

<bundles_post_ra>
// kernel: tpu_custom_call.1
= control target key start
LH: loop header
LB: loop body
LE: loop exit
PB: predicated region body
PF: predicated region fallthrough
CT: control target
= control target key end

     0   :  { %20 = vsyncpa [#allocation3], 0  ;;  %s1999_s0 = inlined_call_operand.vmem [shape: bf16[8,64], index: 0, kind: input, shape index: {}]   ;;  %s2000_s1 = inlined_call_operand.vmem [shape: bf16[64,256], index: 1, kind: input, shape index: {}]   ;;  %s2001_s2 = inlined_call_operand.vmem [shape: f32[1,256], index: 2, kind: input, shape index: {}]   ;;  %s2002_s3 = inlined_call_operand.hbm [shape: bf16[256,256], index: 3, kind: input, shape index: {}]   ;;  %s2003_s4 = inlined_call_operand.vmem [shape: f32[1,256], index: 4, kind: input, shape index: {}]   ;;  %s2004_s5 = inlined_call_operand.vmem [shape: bf16[256,128], index: 5, kind: input, shape index: {}]   ;;  %s2005_s6 = inlined_call_operand.vmem [shape: f32[1,128], index: 6, kind: input, shape index: {}]   ;;  %s2006_s7 = inlined_call_operand.hbm [shape: bf16[128,256], index: 7, kind: input, shape index: {}]   ;;  %s2007_s8 = inlined_call_operand.vmem [shape: f32[1,256], index: 8, kind: input, shape index: {}]   ;;  %s2008_s9 = inlined_call_operand.hbm [shape: bf16[256,256], index: 9, kind: input, shape index: {}]   ;;  %s2009_s10 = inlined_call_operand.vmem [shape: f32[1,256], index: 10, kind: input, shape index: {}]   ;;  %s2010_s11 = inlined_call_operand.vmem [shape: bf16[256,64], index: 11, kind: input, shape index: {}]   ;;  %s2011_s12 = inlined_call_operand.vmem [shape: f32[1,64], index: 12, kind: input, shape index: {}]   ;;  %s2012_s13 = inlined_call_operand.vmem [shape: f32[1,64], index: 13, kind: input, shape index: {}]   ;;  %s2013_s14 = inlined_call_operand.vmem [shape: f32[1,64], index: 14, kind: input, shape index: {}]   ;;  %s2014_s15 = inlined_call_operand.hbm [shape: bf16[8,64], index: 15, kind: output, shape index: {}]  }
   0x1   :  { %21 = vsyncpa [#allocation6], 0 }
   0x2   :  { %22 = vsyncpa [#allocation4], 0  ;;  %s1687_s18 = smov [#allocation5]   ;;  %s1688_s20 = smov [#allocation2]  }
   0x3   :  { %s52_s19 = sshll.u32 %s1687_s18, 4  ;;  %s34_s21 = sshll.u32 %s1688_s20, 4  ;;  %s53_s19 = int_to_ptr.vmem [resolvable:$true] %s52_s19  ;;  %s1774_s21 = int_to_ptr.vmem [resolvable:$true] %s34_s21 }
   0x4   :  { %s1593_s24 = scalar_lea.hbm %s2006_s7, 2048 }
   0x5   :  { %p1594_p0 = scmp.ne.s32.totalorder %s2006_s7, %s1593_s24  ;;  %p1597_p1 = scmp.lt.u32.totalorder %s1593_s24, %s2006_s7 }
   0x7   :  { %p1599_p2 = pnand %p1597_p1, %p1594_p0 }
   0x9   :  { %1602 = shalt.err (!%p1599_p2)
}
   0xa   :  { %s1603_s29 = scalar_lea.vmem %s53_s19, 2048  ;;  %p1608_p4 = scmp.lt.s32.totalorder %s53_s19, %s53_s19 }
   0xb   :  { %p1604_p3 = scmp.ne.s32.totalorder %s53_s19, %s1603_s29  ;;  %p1609_p5 = scmp.lt.s32.totalorder %s1603_s29, %s1603_s29 }
   0xd   :  { %p1610_p6 = por %p1609_p5, %p1608_p4 }
   0xf   :  { %p1611_p7 = pnand %p1610_p6, %p1604_p3 }
  0x11   :  { %1614 = shalt.err (!%p1611_p7)
}
  0x12   :  { %s1689_s30 = smov 128   ;;  %s1690_s16 = smov 8  }
  0x13   :  { %58 = dma.hbm_to_vmem [thread:$0]  %s2006_s7, 2048, %s53_s19, [#allocation6], %s1689_s30, %s1689_s30, %s1690_s16  }
  0x14   :  { %s1615_s23 = scalar_lea.hbm %s2002_s3, 4096 }
  0x15   :  { %p1616_p8 = scmp.ne.s32.totalorder %s2002_s3, %s1615_s23  ;;  %p1619_p9 = scmp.lt.u32.totalorder %s1615_s23, %s2002_s3 }
  0x17   :  { %p1621_p10 = pnand %p1619_p9, %p1616_p8 }
  0x19   :  { %1624 = shalt.err (!%p1621_p10)
}
  0x1a   :  { %s1625_s28 = scalar_lea.vmem %s1774_s21, 4096  ;;  %p1630_p12 = scmp.lt.s32.totalorder %s1774_s21, %s1774_s21 }
  0x1b   :  { %p1626_p11 = scmp.ne.s32.totalorder %s1774_s21, %s1625_s28  ;;  %p1631_p13 = scmp.lt.s32.totalorder %s1625_s28, %s1625_s28 }
  0x1d   :  { %p1632_p0 = por %p1631_p13, %p1630_p12 }
  0x1f   :  { %p1633_p1 = pnand %p1632_p0, %p1626_p11 }
  0x21   :  { %1636 = shalt.err (!%p1633_p1)
}
  0x22   :  { %40 = dma.hbm_to_vmem [thread:$0]  %s2002_s3, 4096, %s1774_s21, [#allocation3], %s1689_s30, %s1689_s30, %s1690_s16  }
  0x23   :  { %s1691_s29 = smov [#allocation7]   ;;  %s1637_s22 = scalar_lea.hbm %s2008_s9, 4096 }
  0x24   :  { %s66_s17 = sshll.u32 %s1691_s29, 4  ;;  %p1638_p2 = scmp.ne.s32.totalorder %s2008_s9, %s1637_s22  ;;  %s67_s17 = int_to_ptr.vmem [resolvable:$true] %s66_s17 }
  0x25   :  { %p1641_p3 = scmp.lt.u32.totalorder %s1637_s22, %s2008_s9 }
  0x27   :  { %p1643_p4 = pnand %p1641_p3, %p1638_p2 }
  0x29   :  { %1646 = shalt.err (!%p1643_p4)
}
  0x2a   :  { %s1647_s27 = scalar_lea.vmem %s67_s17, 4096  ;;  %p1652_p6 = scmp.lt.s32.totalorder %s67_s17, %s67_s17 }
  0x2b   :  { %p1648_p5 = scmp.ne.s32.totalorder %s67_s17, %s1647_s27  ;;  %p1653_p7 = scmp.lt.s32.totalorder %s1647_s27, %s1647_s27 }
  0x2d   :  { %p1654_p8 = por %p1653_p7, %p1652_p6 }
  0x2f   :  { %p1655_p9 = pnand %p1654_p8, %p1648_p5 }
  0x31   :  { %1658 = shalt.err (!%p1655_p9)
}
  0x32   :  { %72 = dma.hbm_to_vmem [thread:$0]  %s2008_s9, 4096, %s67_s17, [#allocation6], %s1689_s30, %s1689_s30, %s1690_s16  }
  0x33   :  { %1681 = dma.done.wait [#allocation3], 4096  }
  0x34   :  { %1682 = vsyncadd [#allocation3], 4294963200 }
  0x35   :  { %1683 = dma.done.wait [#allocation6], 6144  }
  0x36   :  { %1684 = vsyncadd [#allocation6], 4294961152  ;;  %v1692_v0 = vmov 0   ;;  %v1429_v1 = vld [vmem:[%s2000_s1 + $0x4] ss:$8 sps:$4 sm:$0xff]   ;;  %vm154_vm0 = vcmask 523264   ;;  %v104_v54 = vlaneseq }
  0x37   :  { %190 = vmatprep.mubr.bf16.mxu0 %v1692_v0  ;;  %v1431_v2 = vld [vmem:[%s2000_s1] ss:$8 sps:$4 sm:$0xff]   ;;  %158 = vmatprep.subr.bf16.mxu0 %v1429_v1  ;;  %v1432_v3 = vld [vmem:[%s2000_s1 + $0x14] ss:$8 sps:$4 sm:$0xff]   ;;  %v1434_v4 = vld [vmem:[%s2000_s1 + $0x10] ss:$8 sps:$4 sm:$0xff]  }
  0x38   :  { %159 = vmatpush1.bf16.msra.mxu0 %v1431_v2  ;;  %v1435_v5 = vld [vmem:[%s2000_s1 + $0x24] ss:$8 sps:$4 sm:$0xff]   ;;  %v1437_v6 = vld [vmem:[%s2000_s1 + $0x20] ss:$8 sps:$4 sm:$0xff]   ;;  %v1444_v9 = vld [vmem:[#allocation2 + $0x14] ss:$8 sps:$4 sm:$0xff]  }
  0x39   :  { %160 = vmatprep.subr.bf16.mxu0 %v1432_v3  ;;  %v1441_v7 = vld [vmem:[#allocation2 + $0x4] ss:$8 sps:$4 sm:$0xff]   ;;  %v1443_v8 = vld [vmem:[#allocation2] ss:$8 sps:$4 sm:$0xff]   ;;  %v1438_v10 = vld [vmem:[%s2000_s1 + $0x34] ss:$8 sps:$4 sm:$0xff]  }
  0x3a   :  { %411 = vmatprep.subr.bf16.mxu1 %v1441_v7  ;;  %v1446_v11 = vld [vmem:[#allocation2 + $0x10] ss:$8 sps:$4 sm:$0xff]   ;;  %v1447_v12 = vld [vmem:[#allocation2 + $0x24] ss:$8 sps:$4 sm:$0xff]   ;;  %v1449_v14 = vld [vmem:[#allocation2 + $0x20] ss:$8 sps:$4 sm:$0xff]  }
  0x3b   :  { %412 = vmatpush1.bf16.msra.mxu1 %v1443_v8  ;;  %v1440_v13 = vld [vmem:[%s2000_s1 + $0x30] ss:$8 sps:$4 sm:$0xff]   ;;  %v1450_v15 = vld [vmem:[#allocation2 + $0x34] ss:$8 sps:$4 sm:$0xff]   ;;  %v93_v16 = vld [vmem:[%s1999_s0] sm:$0xf] }
  0x3c   :  { %161 = vmatpush1.bf16.msra.mxu0 %v1434_v4  ;;  %413 = vmatprep.subr.bf16.mxu1 %v1444_v9  ;;  %v1452_v17 = vld [vmem:[#allocation2 + $0x30] ss:$8 sps:$4 sm:$0xff]   ;;  %v1453_v18 = vld [vmem:[#allocation2 + $0x44] ss:$8 sps:$4 sm:$0xff]   ;;  %v1455_v19 = vld [vmem:[#allocation2 + $0x40] ss:$8 sps:$4 sm:$0xff]  }
  0x3d   :  { %162 = vmatprep.subr.bf16.mxu0 %v1435_v5  ;;  %v1456_v20 = vld [vmem:[#allocation2 + $0x54] ss:$8 sps:$4 sm:$0xff]   ;;  %v1458_v21 = vld [vmem:[#allocation2 + $0x50] ss:$8 sps:$4 sm:$0xff]   ;;  %v1459_v22 = vld [vmem:[#allocation2 + $0x64] ss:$8 sps:$4 sm:$0xff]  }
  0x3e   :  { %v1461_v23 = vld [vmem:[#allocation2 + $0x60] ss:$8 sps:$4 sm:$0xff]   ;;  %v1462_v24 = vld [vmem:[#allocation2 + $0x74] ss:$8 sps:$4 sm:$0xff]   ;;  %v1464_v25 = vld [vmem:[#allocation2 + $0x70] ss:$8 sps:$4 sm:$0xff]  }
  0x3f   :  { %414 = vmatpush1.bf16.msra.mxu1 %v1446_v11  ;;  %v1465_v26 = vld [vmem:[#allocation2 + $0x84] ss:$8 sps:$4 sm:$0xff]   ;;  %v1467_v27 = vld [vmem:[#allocation2 + $0x80] ss:$8 sps:$4 sm:$0xff]   ;;  %v1468_v28 = vld [vmem:[#allocation2 + $0x94] ss:$8 sps:$4 sm:$0xff]  }
  0x40   :  { %163 = vmatpush1.bf16.msra.mxu0 %v1437_v6  ;;  %415 = vmatprep.subr.bf16.mxu1 %v1447_v12  ;;  %v1470_v29 = vld [vmem:[#allocation2 + $0x90] ss:$8 sps:$4 sm:$0xff]   ;;  %v1471_v30 = vld [vmem:[#allocation2 + $0xa4] ss:$8 sps:$4 sm:$0xff]   ;;  %v1473_v31 = vld [vmem:[#allocation2 + $0xa0] ss:$8 sps:$4 sm:$0xff]  }
  0x41   :  { %164 = vmatprep.subr.bf16.mxu0 %v1438_v10  ;;  %v1474_v32 = vld [vmem:[#allocation2 + $0xb4] ss:$8 sps:$4 sm:$0xff]   ;;  %v1476_v33 = vld [vmem:[#allocation2 + $0xb0] ss:$8 sps:$4 sm:$0xff]   ;;  %v1477_v34 = vld [vmem:[#allocation2 + $0xc4] ss:$8 sps:$4 sm:$0xff]  }
  0x42   :  { %v1479_v35 = vld [vmem:[#allocation2 + $0xc0] ss:$8 sps:$4 sm:$0xff]   ;;  %v1480_v36 = vld [vmem:[#allocation2 + $0xd4] ss:$8 sps:$4 sm:$0xff]   ;;  %v1482_v37 = vld [vmem:[#allocation2 + $0xd0] ss:$8 sps:$4 sm:$0xff]  }
  0x43   :  { %416 = vmatpush1.bf16.msra.mxu1 %v1449_v14  ;;  %v1483_v38 = vld [vmem:[#allocation2 + $0xe4] ss:$8 sps:$4 sm:$0xff]   ;;  %v1485_v39 = vld [vmem:[#allocation2 + $0xe0] ss:$8 sps:$4 sm:$0xff]   ;;  %v1486_v40 = vld [vmem:[#allocation2 + $0xf4] ss:$8 sps:$4 sm:$0xff]  }
  0x44   :  { %165 = vmatpush1.bf16.msra.mxu0 %v1440_v13  ;;  %417 = vmatprep.subr.bf16.mxu1 %v1450_v15  ;;  %v1488_v41 = vld [vmem:[#allocation2 + $0xf0] ss:$8 sps:$4 sm:$0xff]   ;;  %v1489_v42 = vld [vmem:[%s2004_s5 + $0x40] sm:$0xff]   ;;  %v1491_v44 = vld [vmem:[%s2004_s5 + $0x48] sm:$0xff]   ;;  %v105_v55 = vshrl.u32 %v104_v54, 7  ;;  %s1693_s9 = smov [#allocation8]  }
  0x45   :  { %v1490_v43 = vld [vmem:[%s2004_s5] sm:$0xff]   ;;  %1378 = vmatprep.subr.bf16.mxu0 %v1489_v42  ;;  %v1492_v45 = vld [vmem:[%s2004_s5 + $0x8] sm:$0xff]   ;;  %v1493_v46 = vld [vmem:[%s2004_s5 + $0x50] sm:$0xff]   ;;  %s1243_s30 = sshll.u32 %s1693_s9, 4  ;;  %vm1235_vm8 = vcmask 519168   ;;  %s1244_s30 = int_to_ptr.vmem [resolvable:$true] %s1243_s30 }
  0x46   :  { %v1494_v47 = vld [vmem:[%s2004_s5 + $0x10] sm:$0xff]   ;;  %v1495_v48 = vld [vmem:[%s2004_s5 + $0x58] sm:$0xff]   ;;  %v1497_v50 = vld [vmem:[%s2004_s5 + $0x60] sm:$0xff]   ;;  %v1890_v56 = vsub.s32 0, %v105_v55  ;;  %v1895_v58 = vsub.s32 1, %v105_v55  ;;  %p1664_p11 = scmp.lt.s32.totalorder %s1244_s30, %s1244_s30 }
  0x47   :  { %1261 = vmatmul.mubr.msk.bf16.vlgmr.msra.gmra.mrb[0].mxu0 %vm154_vm0, %v93_v16  ;;  %418 = vmatpush1.bf16.msra.mxu1 %v1452_v17  ;;  %v1496_v49 = vld [vmem:[%s2004_s5 + $0x18] sm:$0xff]   ;;  %v1498_v51 = vld [vmem:[%s2004_s5 + $0x20] sm:$0xff]   ;;  %v1499_v52 = vld [vmem:[%s2004_s5 + $0x68] sm:$0xff]  }
  0x48   :  { %419 = vmatprep.subr.bf16.mxu1 %v1453_v18  ;;  %1379 = vmatpush3.bf16.msra.mxu0 %v1490_v43  ;;  %v1500_v53 = vld [vmem:[%s2004_s5 + $0x28] sm:$0xff]   ;;  %v102_v57 = vld [vmem:[%s2001_s2] sm:$0x3]  ;;  %v1501_v10 = vld [vmem:[%s2004_s5 + $0x70] sm:$0xff]  }
  0x49   :  { %1380 = vmatprep.subr.bf16.mxu0 %v1491_v44  ;;  %v107_v59 = vrot.slane %v102_v57, %v1890_v56  ;;  %v111_v60 = vrot.slane %v102_v57, %v1895_v58  ;;  %v1502_v11 = vld [vmem:[%s2004_s5 + $0x30] sm:$0xff]   ;;  %v1503_v12 = vld [vmem:[%s2004_s5 + $0x78] sm:$0xff]   ;;  %v1507_v14 = vld [vmem:[#allocation5 + $0x4] ss:$8 sps:$4 sm:$0xff]  }
  0x4a   :  { %v1504_v13 = vld [vmem:[%s2004_s5 + $0x38] sm:$0xff]   ;;  %v239_v15 = vld [vmem:[%s2003_s4] sm:$0x3]  ;;  %v1549_v57 = vld [vmem:[#allocation7 + $0x64] ss:$8 sps:$4 sm:$0xff]  }
  0x4b   :  { %420 = vmatpush1.bf16.msra.mxu1 %v1455_v19  ;;  %v244_v16 = vrot.slane %v239_v15, %v1890_v56  ;;  %v248_v17 = vrot.slane %v239_v15, %v1895_v58  ;;  %v1528_v42 = vld [vmem:[#allocation5 + $0x74] ss:$8 sps:$4 sm:$0xff]   ;;  %v1526_v43 = vld [vmem:[#allocation5 + $0x70] ss:$8 sps:$4 sm:$0xff]   ;;  %v1529_v44 = vld [vmem:[#allocation7] ss:$8 sps:$4 sm:$0xff]  }
  0x4c   :  { %421 = vmatprep.subr.bf16.mxu1 %v1456_v20  ;;  %1381 = vmatpush3.bf16.msra.mxu0 %v1492_v45  ;;  %v1531_v45 = vld [vmem:[#allocation7 + $0x4] ss:$8 sps:$4 sm:$0xff]   ;;  %v1546_v54 = vld [vmem:[#allocation7 + $0x54] ss:$8 sps:$4 sm:$0xff]   ;;  %v1544_v55 = vld [vmem:[#allocation7 + $0x50] ss:$8 sps:$4 sm:$0xff]  }
  0x4d   :  { %1382 = vmatprep.subr.bf16.mxu0 %v1493_v46  ;;  %v1534_v46 = vld [vmem:[#allocation7 + $0x14] ss:$8 sps:$4 sm:$0xff]  }
  0x4f   :  { %422 = vmatpush1.bf16.msra.mxu1 %v1458_v21 }
  0x50   :  { %423 = vmatprep.subr.bf16.mxu1 %v1459_v22  ;;  %1383 = vmatpush3.bf16.msra.mxu0 %v1494_v47  ;;  %v1532_v47 = vld [vmem:[#allocation7 + $0x10] ss:$8 sps:$4 sm:$0xff]  }
  0x51   :  { %1384 = vmatprep.subr.bf16.mxu0 %v1495_v48  ;;  %v1537_v48 = vld [vmem:[#allocation7 + $0x24] ss:$8 sps:$4 sm:$0xff]  }
  0x53   :  { %424 = vmatpush1.bf16.msra.mxu1 %v1461_v23 }
  0x54   :  { %425 = vmatprep.subr.bf16.mxu1 %v1462_v24  ;;  %1385 = vmatpush3.bf16.msra.mxu0 %v1496_v49  ;;  %v1535_v49 = vld [vmem:[#allocation7 + $0x20] ss:$8 sps:$4 sm:$0xff]  }
  0x55   :  { %1386 = vmatprep.subr.bf16.mxu0 %v1497_v50  ;;  %v1540_v50 = vld [vmem:[#allocation7 + $0x34] ss:$8 sps:$4 sm:$0xff]  }
  0x57   :  { %426 = vmatpush1.bf16.msra.mxu1 %v1464_v25 }
  0x58   :  { %427 = vmatprep.subr.bf16.mxu1 %v1465_v26  ;;  %1387 = vmatpush3.bf16.msra.mxu0 %v1498_v51  ;;  %v1538_v51 = vld [vmem:[#allocation7 + $0x30] ss:$8 sps:$4 sm:$0xff]  }
  0x59   :  { %1388 = vmatprep.subr.bf16.mxu0 %v1499_v52  ;;  %v1543_v52 = vld [vmem:[#allocation7 + $0x44] ss:$8 sps:$4 sm:$0xff]  }
  0x5b   :  { %428 = vmatpush1.bf16.msra.mxu1 %v1467_v27 }
  0x5c   :  { %429 = vmatprep.subr.bf16.mxu1 %v1468_v28  ;;  %1389 = vmatpush3.bf16.msra.mxu0 %v1500_v53  ;;  %v1541_v53 = vld [vmem:[#allocation7 + $0x40] ss:$8 sps:$4 sm:$0xff]  }
  0x5d   :  { %1390 = vmatprep.subr.bf16.mxu0 %v1501_v10  ;;  %v1568_v10 = vld [vmem:[#allocation7 + $0xd0] ss:$8 sps:$4 sm:$0xff]  }
  0x5f   :  { %430 = vmatpush1.bf16.msra.mxu1 %v1470_v29  ;;  %v1505_v29 = vld [vmem:[#allocation5] ss:$8 sps:$4 sm:$0xff]  }
  0x60   :  { %431 = vmatprep.subr.bf16.mxu1 %v1471_v30  ;;  %1391 = vmatpush3.bf16.msra.mxu0 %v1502_v11  ;;  %v1573_v11 = vld [vmem:[#allocation7 + $0xe4] ss:$8 sps:$4 sm:$0xff]  }
  0x61   :  { %1392 = vmatprep.subr.bf16.mxu0 %v1503_v12  ;;  %v1571_v12 = vld [vmem:[#allocation7 + $0xe0] ss:$8 sps:$4 sm:$0xff]  }
  0x63   :  { %432 = vmatpush1.bf16.msra.mxu1 %v1473_v31  ;;  %v1510_v31 = vld [vmem:[#allocation5 + $0x14] ss:$8 sps:$4 sm:$0xff]  }
  0x64   :  { %433 = vmatprep.subr.bf16.mxu1 %v1474_v32  ;;  %1393 = vmatpush3.bf16.msra.mxu0 %v1504_v13  ;;  %v1508_v32 = vld [vmem:[#allocation5 + $0x10] ss:$8 sps:$4 sm:$0xff]  }
  0x65   :  { %744 = vmatprep.subr.bf16.mxu0 %v1507_v14  ;;  %v1294_v14 = vld [vmem:[%s2005_s6] ss:$0 sm:$0xff] }
  0x67   :  { %434 = vmatpush1.bf16.msra.mxu1 %v1476_v33  ;;  %v1513_v33 = vld [vmem:[#allocation5 + $0x24] ss:$8 sps:$4 sm:$0xff]  }
  0x68   :  { %435 = vmatprep.subr.bf16.mxu1 %v1477_v34  ;;  %v1511_v34 = vld [vmem:[#allocation5 + $0x20] ss:$8 sps:$4 sm:$0xff]  }
  0x6b   :  { %436 = vmatpush1.bf16.msra.mxu1 %v1479_v35  ;;  %v1516_v35 = vld [vmem:[#allocation5 + $0x34] ss:$8 sps:$4 sm:$0xff]  }
  0x6c   :  { %437 = vmatprep.subr.bf16.mxu1 %v1480_v36  ;;  %v1514_v36 = vld [vmem:[#allocation5 + $0x30] ss:$8 sps:$4 sm:$0xff]  }
  0x6f   :  { %438 = vmatpush1.bf16.msra.mxu1 %v1482_v37  ;;  %v1519_v37 = vld [vmem:[#allocation5 + $0x44] ss:$8 sps:$4 sm:$0xff]  }
  0x70   :  { %439 = vmatprep.subr.bf16.mxu1 %v1483_v38  ;;  %v1517_v38 = vld [vmem:[#allocation5 + $0x40] ss:$8 sps:$4 sm:$0xff]  }
  0x73   :  { %440 = vmatpush1.bf16.msra.mxu1 %v1485_v39  ;;  %v1522_v39 = vld [vmem:[#allocation5 + $0x54] ss:$8 sps:$4 sm:$0xff]  }
  0x74   :  { %441 = vmatprep.subr.bf16.mxu1 %v1486_v40  ;;  %v1520_v40 = vld [vmem:[#allocation5 + $0x50] ss:$8 sps:$4 sm:$0xff]  }
  0x77   :  { %442 = vmatpush1.bf16.msra.mxu1 %v1488_v41  ;;  %v1525_v41 = vld [vmem:[#allocation5 + $0x64] ss:$8 sps:$4 sm:$0xff]  }
  0x78   :  { %991 = vmatprep.subr.bf16.mxu1 %v1531_v45  ;;  %v1589_v45 = vld [vmem:[%s2010_s11 + $0x70] sm:$0xff]  }
 0x11a   :  { %v192_v61 = vpop.f32.mrb[0].mxu0 }
 0x11b   :  { %v193_v62 = vadd.f32 %v192_v61, %v107_v59  ;;  %v194_v63 = vpop.f32.mrb[1].mxu0  ;;  %v1547_v59 = vld [vmem:[#allocation7 + $0x60] ss:$8 sps:$4 sm:$0xff]   ;;  %v1550_v61 = vld [vmem:[#allocation7 + $0x70] ss:$8 sps:$4 sm:$0xff]  }
 0x11c   :  { %v195_v1 = vadd.f32 %v194_v63, %v111_v60  ;;  %v196_v2 = vpop.f32.mrb[2].mxu0  ;;  %v1552_v60 = vld [vmem:[#allocation7 + $0x74] ss:$8 sps:$4 sm:$0xff]   ;;  %v1553_v63 = vld [vmem:[#allocation7 + $0x80] ss:$8 sps:$4 sm:$0xff]  }
 0x11d   :  { %vm199_vm1 = vcmp.ge.f32.partialorder %v193_v62, 0.0  ;;  %v201_v3 = vmul.f32 0.1, %v193_v62  ;;  %v197_v4 = vpop.f32.mrb[3].mxu0  ;;  %v1556_v2 = vld [vmem:[#allocation7 + $0x90] ss:$8 sps:$4 sm:$0xff]  }
 0x11e   :  { %vm200_vm2 = vcmp.ge.f32.partialorder %v195_v1, 0.0  ;;  %v202_v5 = vmul.f32 0.1, %v195_v1  ;;  %v1559_v4 = vld [vmem:[#allocation7 + $0xa0] ss:$8 sps:$4 sm:$0xff]  }
 0x11f   :  { %v203_v6 = vsel %vm199_vm1, %v193_v62, %v201_v3  ;;  %v1555_v62 = vld [vmem:[#allocation7 + $0x84] ss:$8 sps:$4 sm:$0xff]  }
 0x120   :  { %v204_v7 = vsel %vm200_vm2, %v195_v1, %v202_v5  ;;  %v205_v9 = vpack.c.bf16 %v203_v6, %v203_v6  ;;  %v1558_v1 = vld [vmem:[#allocation7 + $0x94] ss:$8 sps:$4 sm:$0xff]   ;;  %v1561_v3 = vld [vmem:[#allocation7 + $0xa4] ss:$8 sps:$4 sm:$0xff]   ;;  %v1562_v6 = vld [vmem:[#allocation7 + $0xb0] ss:$8 sps:$4 sm:$0xff]  }
 0x121   :  { %v206_v8 = vpack.c.bf16 %v204_v7, %v204_v7  ;;  %v1564_v5 = vld [vmem:[#allocation7 + $0xb4] ss:$8 sps:$4 sm:$0xff]   ;;  %v1567_v7 = vld [vmem:[#allocation7 + $0xc4] ss:$8 sps:$4 sm:$0xff]  }
 0x123   :  { %443 = vmatprep.mubr.bf16.mxu1 %v206_v8  ;;  %v1565_v8 = vld [vmem:[#allocation7 + $0xc0] ss:$8 sps:$4 sm:$0xff]  }
 0x124   :  { %444 = vmatmul.mubr.bf16.vlgmr.msra.gmra.mrb[0].mxu1 %v205_v9  ;;  %v1570_v9 = vld [vmem:[#allocation7 + $0xd4] ss:$8 sps:$4 sm:$0xff]  }
 0x125   :  { %992 = vmatpush1.bf16.msra.mxu1 %v1529_v44 }
 0x126   :  { %993 = vmatprep.subr.bf16.mxu1 %v1534_v46  ;;  %v1590_v46 = vld [vmem:[%s2010_s11 + $0x30] sm:$0xff]  }
 0x129   :  { %994 = vmatpush1.bf16.msra.mxu1 %v1532_v47  ;;  %v1591_v47 = vld [vmem:[%s2010_s11 + $0x78] sm:$0xff]  }
 0x12a   :  { %995 = vmatprep.subr.bf16.mxu1 %v1537_v48  ;;  %v1592_v48 = vld [vmem:[%s2010_s11 + $0x38] sm:$0xff]  }
 0x12d   :  { %996 = vmatpush1.bf16.msra.mxu1 %v1535_v49  ;;  %v819_v49 = vld [vmem:[%s2009_s10] sm:$0x3] }
 0x12e   :  { %997 = vmatprep.subr.bf16.mxu1 %v1540_v50  ;;  %v824_v50 = vrot.slane %v819_v49, %v1890_v56 }
 0x131   :  { %998 = vmatpush1.bf16.msra.mxu1 %v1538_v51  ;;  %v828_v51 = vrot.slane %v819_v49, %v1895_v58 }
 0x132   :  { %999 = vmatprep.subr.bf16.mxu1 %v1543_v52 }
 0x135   :  { %1000 = vmatpush1.bf16.msra.mxu1 %v1541_v53 }
 0x136   :  { %1001 = vmatprep.subr.bf16.mxu1 %v1546_v54 }
 0x139   :  { %1002 = vmatpush1.bf16.msra.mxu1 %v1544_v55 }
 0x13a   :  { %1003 = vmatprep.subr.bf16.mxu1 %v1549_v57 }
 0x13d   :  { %1004 = vmatpush1.bf16.msra.mxu1 %v1547_v59 }
 0x13e   :  { %1005 = vmatprep.subr.bf16.mxu1 %v1552_v60 }
 0x141   :  { %1006 = vmatpush1.bf16.msra.mxu1 %v1550_v61 }
 0x142   :  { %1007 = vmatprep.subr.bf16.mxu1 %v1555_v62 }
 0x145   :  { %1008 = vmatpush1.bf16.msra.mxu1 %v1553_v63 }
 0x146   :  { %1009 = vmatprep.subr.bf16.mxu1 %v1558_v1 }
 0x149   :  { %1010 = vmatpush1.bf16.msra.mxu1 %v1556_v2 }
 0x14a   :  { %1011 = vmatprep.subr.bf16.mxu1 %v1561_v3 }
 0x14d   :  { %1012 = vmatpush1.bf16.msra.mxu1 %v1559_v4 }
 0x14e   :  { %1013 = vmatprep.subr.bf16.mxu1 %v1564_v5 }
 0x151   :  { %1014 = vmatpush1.bf16.msra.mxu1 %v1562_v6 }
 0x152   :  { %1015 = vmatprep.subr.bf16.mxu1 %v1567_v7 }
 0x155   :  { %1016 = vmatpush1.bf16.msra.mxu1 %v1565_v8 }
 0x156   :  { %1017 = vmatprep.subr.bf16.mxu1 %v1570_v9  ;;  %v1376_v9 = vld [vmem:[%s2012_s13] ss:$0 sm:$0xff] }
 0x159   :  { %1018 = vmatpush1.bf16.msra.mxu1 %v1568_v10 }
 0x15a   :  { %1019 = vmatprep.subr.bf16.mxu1 %v1573_v11  ;;  %v1377_v11 = vld [vmem:[%s2013_s14] ss:$0 sm:$0xff] }
 0x15d   :  { %1020 = vmatpush1.bf16.msra.mxu1 %v1571_v12 }
 0x1f7   :  { %v445_v18 = vpop.f32.mrb[0].mxu1 }
 0x1f8   :  { %v446_v19 = vadd.f32 %v445_v18, %v244_v16  ;;  %v447_v20 = vpop.f32.mrb[1].mxu1 }
 0x1f9   :  { %v448_v21 = vadd.f32 %v447_v20, %v248_v17  ;;  %v449_v22 = vpop.f32.mrb[2].mxu1 }
 0x1fa   :  { %vm452_vm3 = vcmp.ge.f32.partialorder %v446_v19, 0.0  ;;  %v454_v23 = vmul.f32 0.1, %v446_v19  ;;  %v450_v24 = vpop.f32.mrb[3].mxu1  ;;  %v1574_v22 = vld [vmem:[#allocation7 + $0xf0] ss:$8 sps:$4 sm:$0xff]  }
 0x1fb   :  { %vm453_vm4 = vcmp.ge.f32.partialorder %v448_v21, 0.0  ;;  %v455_v25 = vmul.f32 0.1, %v448_v21  ;;  %v1578_v24 = vld [vmem:[%s2010_s11] sm:$0xff]  }
 0x1fc   :  { %v456_v26 = vsel %vm452_vm3, %v446_v19, %v454_v23  ;;  %v1577_v23 = vld [vmem:[%s2010_s11 + $0x40] sm:$0xff]  }
 0x1fd   :  { %v457_v27 = vsel %vm453_vm4, %v448_v21, %v455_v25  ;;  %v458_v30 = vpack.c.bf16 %v456_v26, %v456_v26  ;;  %v1576_v21 = vld [vmem:[#allocation7 + $0xf4] ss:$8 sps:$4 sm:$0xff]   ;;  %v1579_v25 = vld [vmem:[%s2010_s11 + $0x48] sm:$0xff]  }
 0x1fe   :  { %v459_v28 = vpack.c.bf16 %v457_v27, %v457_v27  ;;  %1021 = vmatprep.subr.bf16.mxu1 %v1576_v21  ;;  %v1580_v26 = vld [vmem:[%s2010_s11 + $0x8] sm:$0xff]   ;;  %v1581_v27 = vld [vmem:[%s2010_s11 + $0x50] sm:$0xff]  }
 0x1ff   :  { %1022 = vmatpush1.bf16.msra.mxu1 %v1574_v22 }
 0x200   :  { %627 = vmatprep.mubr.bf16.mxu0 %v459_v28  ;;  %v1582_v28 = vld [vmem:[%s2010_s11 + $0x10] sm:$0xff]  }
 0x201   :  { %628 = vmatmul.mubr.bf16.vlgmr.msra.gmra.mrb[4].mxu0 %v458_v30  ;;  %v1584_v30 = vld [vmem:[%s2010_s11 + $0x18] sm:$0xff]  }
 0x202   :  { %745 = vmatpush1.bf16.msra.mxu0 %v1505_v29  ;;  %776 = vmatprep.mubr.bf16.mxu0 %v1692_v0  ;;  %v1523_v0 = vld [vmem:[#allocation5 + $0x60] ss:$8 sps:$4 sm:$0xff]   ;;  %v1583_v29 = vld [vmem:[%s2010_s11 + $0x58] sm:$0xff]  }
 0x203   :  { %746 = vmatprep.subr.bf16.mxu0 %v1510_v31  ;;  %v1585_v31 = vld [vmem:[%s2010_s11 + $0x60] sm:$0xff]  }
 0x206   :  { %747 = vmatpush1.bf16.msra.mxu0 %v1508_v32  ;;  %v1586_v32 = vld [vmem:[%s2010_s11 + $0x20] sm:$0xff]  }
 0x207   :  { %748 = vmatprep.subr.bf16.mxu0 %v1513_v33  ;;  %v1587_v33 = vld [vmem:[%s2010_s11 + $0x68] sm:$0xff]  }
 0x20a   :  { %749 = vmatpush1.bf16.msra.mxu0 %v1511_v34  ;;  %v1588_v34 = vld [vmem:[%s2010_s11 + $0x28] sm:$0xff]  }
 0x20b   :  { %750 = vmatprep.subr.bf16.mxu0 %v1516_v35  ;;  %v652_v35 = vld [vmem:[%s2007_s8] sm:$0x3] }
 0x20e   :  { %751 = vmatpush1.bf16.msra.mxu0 %v1514_v36  ;;  %v657_v36 = vrot.slane %v652_v35, %v1890_v56  ;;  %v1359_v56 = vld [vmem:[%s2011_s12] ss:$0 sm:$0xff]  ;;  %s1659_s12 = scalar_lea.vmem %s1244_s30, 64 }
 0x20f   :  { %752 = vmatprep.subr.bf16.mxu0 %v1519_v37  ;;  %v661_v37 = vrot.slane %v652_v35, %v1895_v58  ;;  %p1660_p10 = scmp.ne.s32.totalorder %s1244_s30, %s1659_s12  ;;  %p1665_p12 = scmp.lt.s32.totalorder %s1659_s12, %s1659_s12 }
 0x211   :  { %p1666_p13 = por %p1665_p12, %p1664_p11 }
 0x212   :  { %753 = vmatpush1.bf16.msra.mxu0 %v1517_v38 }
 0x213   :  { %754 = vmatprep.subr.bf16.mxu0 %v1522_v39  ;;  %p1667_p0 = pnand %p1666_p13, %p1660_p10 }
 0x216   :  { %755 = vmatpush1.bf16.msra.mxu0 %v1520_v40 }
 0x217   :  { %756 = vmatprep.subr.bf16.mxu0 %v1525_v41 }
 0x21a   :  { %757 = vmatpush1.bf16.msra.mxu0 %v1523_v0 }
 0x21b   :  { %758 = vmatprep.subr.bf16.mxu0 %v1528_v42 }
 0x21e   :  { %759 = vmatpush1.bf16.msra.mxu0 %v1526_v43 }
 0x21f   :  { %1400 = vmatprep.subr.bf16.mxu0 %v1577_v23 }
 0x2d4   :  { %v1394_v13 = vpop.f32.mrb[4].mxu0 }
 0x2d5   :  { %v1395_v15 = vpop.f32.mrb[5].mxu0 }
 0x2d6   :  { %v1396_v16 = vadd.f32 %v1395_v15, %v1394_v13  ;;  %v1397_v17 = vpop.f32.mrb[6].mxu0 }
 0x2d7   :  { %v1398_v18 = vpop.f32.mrb[7].mxu0 }
 0x2d8   :  { %v630_v19 = vadd.f32 %v1396_v16, %v1294_v14 }
 0x2da   :  { %v635_v20 = vpack.c.bf16 %v630_v19, %v630_v19 }
 0x2dc   :  { %777 = vmatmul.mubr.bf16.vlgmr.msra.gmra.mrb[8].mxu0 %v635_v20 }
 0x2dd   :  { %1401 = vmatpush3.bf16.msra.mxu0 %v1578_v24 }
 0x2de   :  { %1402 = vmatprep.subr.bf16.mxu0 %v1579_v25 }
 0x2e1   :  { %1403 = vmatpush3.bf16.msra.mxu0 %v1580_v26 }
 0x2e2   :  { %1404 = vmatprep.subr.bf16.mxu0 %v1581_v27 }
 0x2e5   :  { %1405 = vmatpush3.bf16.msra.mxu0 %v1582_v28 }
 0x2e6   :  { %1406 = vmatprep.subr.bf16.mxu0 %v1583_v29 }
 0x2e9   :  { %1407 = vmatpush3.bf16.msra.mxu0 %v1584_v30 }
 0x2ea   :  { %1408 = vmatprep.subr.bf16.mxu0 %v1585_v31 }
 0x2ed   :  { %1409 = vmatpush3.bf16.msra.mxu0 %v1586_v32 }
 0x2ee   :  { %1410 = vmatprep.subr.bf16.mxu0 %v1587_v33 }
 0x2f1   :  { %1411 = vmatpush3.bf16.msra.mxu0 %v1588_v34 }
 0x2f2   :  { %1412 = vmatprep.subr.bf16.mxu0 %v1589_v45 }
 0x2f5   :  { %1413 = vmatpush3.bf16.msra.mxu0 %v1590_v46 }
 0x2f6   :  { %1414 = vmatprep.subr.bf16.mxu0 %v1591_v47 }
 0x2f9   :  { %1415 = vmatpush3.bf16.msra.mxu0 %v1592_v48 }
 0x3af   :  { %v778_v38 = vpop.f32.mrb[8].mxu0 }
 0x3b0   :  { %v779_v39 = vadd.f32 %v778_v38, %v657_v36  ;;  %v780_v40 = vpop.f32.mrb[9].mxu0 }
 0x3b1   :  { %v781_v41 = vadd.f32 %v780_v40, %v661_v37  ;;  %v782_v0 = vpop.f32.mrb[10].mxu0 }
 0x3b2   :  { %v783_v42 = vpop.f32.mrb[11].mxu0  ;;  %v785_v44 = vpack.c.bf16 %v779_v39, %v779_v39 }
 0x3b3   :  { %v786_v43 = vpack.c.bf16 %v781_v41, %v781_v41 }
 0x3b5   :  { %1023 = vmatprep.mubr.bf16.mxu1 %v786_v43 }
 0x3b6   :  { %1024 = vmatmul.mubr.bf16.vlgmr.msra.gmra.mrb[4].mxu1 %v785_v44 }
 0x489   :  { %v1025_v52 = vpop.f32.mrb[4].mxu1 }
 0x48a   :  { %v1026_v53 = vadd.f32 %v1025_v52, %v824_v50  ;;  %v1027_v54 = vpop.f32.mrb[5].mxu1 }
 0x48b   :  { %v1028_v55 = vadd.f32 %v1027_v54, %v828_v51  ;;  %v1029_v57 = vpop.f32.mrb[6].mxu1 }
 0x48c   :  { %vm1032_vm5 = vcmp.ge.f32.partialorder %v1026_v53, 0.0  ;;  %v1034_v59 = vmul.f32 0.1, %v1026_v53  ;;  %v1030_v60 = vpop.f32.mrb[7].mxu1 }
 0x48d   :  { %vm1033_vm6 = vcmp.ge.f32.partialorder %v1028_v55, 0.0  ;;  %v1035_v61 = vmul.f32 0.1, %v1028_v55 }
 0x48e   :  { %v1036_v62 = vsel %vm1032_vm5, %v1026_v53, %v1034_v59 }
 0x48f   :  { %v1037_v63 = vsel %vm1033_vm6, %v1028_v55, %v1035_v61  ;;  %v1038_v2 = vpack.c.bf16 %v1036_v62, %v1036_v62 }
 0x490   :  { %v1039_v1 = vpack.c.bf16 %v1037_v63, %v1037_v63 }
 0x492   :  { %1207 = vmatprep.mubr.bf16.mxu0 %v1039_v1 }
 0x493   :  { %1208 = vmatmul.mubr.bf16.vlgmr.msra.gmra.mrb[12].mxu0 %v1038_v2 }
 0x566   :  { %v1416_v3 = vpop.f32.mrb[12].mxu0 }
 0x567   :  { %v1417_v58 = vpop.f32.mrb[13].mxu0 }
 0x568   :  { %v1418_v4 = vadd.f32 %v1417_v58, %v1416_v3  ;;  %v1419_v5 = vpop.f32.mrb[14].mxu0 }
 0x569   :  { %v1420_v6 = vpop.f32.mrb[15].mxu0 }
 0x56a   :  { %v1210_v7 = vadd.f32 %v1418_v4, %v1359_v56 }
 0x56c   :  { %vm1215_vm7 = vcmp.ge.f32.partialorder %v1210_v7, 0.0  ;;  %v1216_v8 = vmul.f32 0.1, %v1210_v7 }
 0x56e   :  { %v1217_v10 = vsel %vm1215_vm7, %v1210_v7, %v1216_v8 }
 0x56f   :  { %v1225_v12 = vmul.f32 %v1376_v9, %v1217_v10 }
 0x571   :  { %v1233_v13 = vadd.f32 %v1377_v11, %v1225_v12 }
 0x573   :  { %v1234_v14 = vpack.c.bf16 %v1233_v13, %v1233_v13 }
 0x575   :  { %1236 = vst.msk [vmem:[#allocation8] sm:$0xf] %vm1235_vm8, %v1234_v14 }
 0x576   :  { %1670 = shalt.err (!%p1667_p0)
}
 0x577   :  { %s1671_s17 = scalar_lea.hbm %s2014_s15, 64 }
 0x578   :  { %p1672_p1 = scmp.ne.s32.totalorder %s2014_s15, %s1671_s17  ;;  %p1675_p2 = scmp.lt.u32.totalorder %s1671_s17, %s2014_s15 }
 0x57a   :  { %p1677_p3 = pnand %p1675_p2, %p1672_p1 }
 0x57c   :  { %1680 = shalt.err (!%p1677_p3)
}
 0x57d   :  { %1246 = dma.vmem_to_hbm [thread:$0]  %s1244_s30, 64, %s2014_s15, [#allocation4]  }
 0x57e   :  { %1685 = dma.done.wait [#allocation4], 64  }
 0x57f   :  { %1686 = vsyncadd [#allocation4], 4294967232 }
 0x580   :  { %1250 = vsyncpa [#allocation3], 1 }
 0x581   :  { %1251 = vsyncpa [#allocation6], 1 }
 0x582   :  { %1252 = vsyncpa [#allocation4], 1 }

</bundles_post_ra>
